<compile_context>
chip_gen: v7x
topology: tpu7x:2x2x1
jax: 0.10.0
libtpu: 0.0.40
codegen_flags: <defaults>
</compile_context>

<pallas_src>
import jax
import jax.numpy as jnp
from jax.experimental import pallas as pl
from jax.experimental.pallas import tpu as pltpu


def gat_choices_kernel(x_ref, adj_ref, w_ref, a_sd_ref, w_out_row_ref, b_ref,
                       probs_ref, stats_ref):
    # ---- GAT layer (model forward hot path), one graph per grid step ----
    x = x_ref[...]                                                     # (N, F_in)
    h = jnp.dot(x, w_ref[...], preferred_element_type=jnp.float32)     # (N, F_out)

    # Both attention coefficients from ONE matmul: a_sd = [a_src | a_dst].
    coef = jnp.dot(h, a_sd_ref[...], preferred_element_type=jnp.float32)  # (N, 2)
    src = coef[:, 0:1]                                                 # (N, 1)
    dst_row = jnp.transpose(coef[:, 1:2])                              # (1, N)  tiny XLU transpose

    e = src + dst_row                                                  # (N, N) broadcast
    e = jnp.where(e > 0, e, 0.2 * e)                                   # LeakyReLU(0.2)
    mask = adj_ref[...] > 0.0
    e = jnp.where(mask, e, jnp.float32(-1e30))
    e = e - jnp.max(e, axis=-1, keepdims=True)
    # Self-loops guarantee a finite row max, so masked entries underflow to
    # exactly 0 in exp(); the second where(mask, ...) is unnecessary.
    p = jnp.exp(e)
    # NOTE: pl.reciprocal(denom, approx=True) is the production choice here;
    # exact divide kept so the strict f32 reference check below passes.
    alpha = p / (jnp.sum(p, axis=-1, keepdims=True) + 1e-9)            # masked softmax

    h_agg = jnp.dot(alpha, h, preferred_element_type=jnp.float32)      # (N, F_out)
    h_agg = jnp.where(h_agg > 0, h_agg, jnp.exp(h_agg) - 1.0)          # ELU

    # Sigmoid head as a VPU dot-product (avoids a width-1 MXU matmul).
    logits = jnp.sum(h_agg * w_out_row_ref[...], axis=-1, keepdims=True) + b_ref[0]  # (N, 1)
    logits_row = jnp.transpose(logits)                                 # (1, N) lane-dense
    probs_row = 1.0 / (1.0 + jnp.exp(-logits_row))                     # sigmoid
    probs_ref[...] = probs_row

    # ---- Choices.forward counting: prob > 0.5 -> success (lane reduction) ----
    succ = jnp.sum(jnp.where(probs_row > 0.5, 1.0, 0.0),
                   axis=-1, keepdims=True)                             # (1, 1)
    stats_ref[...] = jnp.broadcast_to(succ, stats_ref.shape)           # one lane-vector store


def choices_forward(x, adj, w, a_src, a_dst, w_out, b_out):
    B, N, F_in = x.shape
    F_out = w.shape[1]

    # Parameter glue (tiny, one-time): fuse attention vectors, row-orient w_out.
    a_sd = jnp.concatenate([a_src, a_dst], axis=1)          # (F_out, 2)
    w_out_row = jnp.transpose(w_out)                        # (1, F_out)
    b_flat = jnp.reshape(b_out, (1,)).astype(jnp.float32)   # SMEM scalar

    grid_spec = pltpu.PrefetchScalarGridSpec(
        num_scalar_prefetch=0,
        grid=(B,),
        in_specs=[
            pl.BlockSpec((None, N, F_in), lambda b: (b, 0, 0)),   # x, per graph
            pl.BlockSpec((None, N, N), lambda b: (b, 0, 0)),      # adj, per graph
            pl.BlockSpec((F_in, F_out), lambda b: (0, 0)),        # shared weights
            pl.BlockSpec((F_out, 2), lambda b: (0, 0)),           # [a_src | a_dst]
            pl.BlockSpec((1, F_out), lambda b: (0, 0)),           # w_out as a row
            pl.BlockSpec(memory_space=pltpu.MemorySpace.SMEM),    # bias scalar
        ],
        out_specs=[
            pl.BlockSpec((None, 1, N), lambda b: (b, 0, 0)),      # lane-dense probs
            pl.BlockSpec((None, 1, 128), lambda b: (b, 0, 0)),    # packed per-graph count
        ],
    )

    probs, stats = pl.pallas_call(
        gat_choices_kernel,
        out_shape=(
            jax.ShapeDtypeStruct((B, 1, N), jnp.float32),
            jax.ShapeDtypeStruct((B, 1, 128), jnp.float32),
        ),
        grid_spec=grid_spec,
        compiler_params=pltpu.CompilerParams(dimension_semantics=("parallel",)),
    )(x, adj, w, a_sd, w_out_row, b_flat)

    probs = probs[:, 0, :]                                   # (B, N)
    success_of_picking = jnp.sum(stats[:, 0, 0])             # dataset-level accumulation
    targets = jnp.float32(B * N)                             # compile-time constant
    success_rate = success_of_picking / targets
    return probs, success_of_picking, targets, success_rate


def _reference(x, adj, w, a_src, a_dst, w_out, b_out):
    def one(xg, ag):
        h = xg @ w
        e = (h @ a_src) + (h @ a_dst).T
        e = jnp.where(e > 0, e, 0.2 * e)
        mask = ag > 0.0
        e = jnp.where(mask, e, -1e30)
        e = e - jnp.max(e, axis=-1, keepdims=True)
        p = jnp.where(mask, jnp.exp(e), 0.0)
        alpha = p / (jnp.sum(p, axis=-1, keepdims=True) + 1e-9)
        h_agg = alpha @ h
        h_agg = jnp.where(h_agg > 0, h_agg, jnp.exp(h_agg) - 1.0)
        probs = jax.nn.sigmoid(h_agg @ w_out + b_out)
        return probs[:, 0]

    probs = jax.vmap(one)(x, adj)                            # (B, N)
    succ = jnp.sum(probs > 0.5).astype(jnp.float32)
    targets = jnp.float32(probs.size)
    return probs, succ, targets, succ / targets


if __name__ == "__main__":
    B, N, F_in, F_out = 4, 16, 8, 32
    key = jax.random.PRNGKey(0)
    k1, k2, k3, k4, k5 = jax.random.split(key, 5)

    # synthetic "graph batch" (stands in for the JSON dataset / DataLoader)
    x = jax.random.normal(k1, (B, N, F_in), jnp.float32)
    idx = jnp.arange(N)
    bandwidth = (1 + jnp.arange(B) % 3)[:, None, None]                      # per-graph band
    adj = (jnp.abs(idx[:, None] - idx[None, :])[None] <= bandwidth).astype(jnp.float32)
    # every graph has self-loops -> every softmax row has >= 1 valid entry.

    # deterministic GAT parameters (stand in for the .pth checkpoint)
    w = 0.3 * jax.random.normal(k2, (F_in, F_out), jnp.float32)
    a_src = 0.3 * jax.random.normal(k3, (F_out, 1), jnp.float32)
    a_dst = 0.3 * jax.random.normal(k4, (F_out, 1), jnp.float32)
    w_out = 0.3 * jax.random.normal(k5, (F_out, 1), jnp.float32)
    b_out = jnp.zeros((1, 1), jnp.float32)

    probs, succ, targets, rate = choices_forward(x, adj, w, a_src, a_dst, w_out, b_out)
    jax.block_until_ready(rate)

    # correctness check vs pure-JAX reference
    r_probs, r_succ, r_targets, r_rate = _reference(x, adj, w, a_src, a_dst, w_out, b_out)
    assert jnp.allclose(probs, r_probs, atol=1e-4, rtol=1e-4)
    assert jnp.allclose(succ, r_succ)
    assert jnp.allclose(targets, r_targets)
    assert jnp.allclose(rate, r_rate, atol=1e-6)

    print("KERNEL_OK")
</pallas_src>

<mosaic_0001>
module attributes {stable_mosaic.version = 11 : i64} {
  func.func @gat_choices_kernel(%arg0: i32, %arg1: memref<1x16x8xf32, #tpu.memory_space<vmem>>, %arg2: memref<1x16x16xf32, #tpu.memory_space<vmem>>, %arg3: memref<8x32xf32, #tpu.memory_space<vmem>>, %arg4: memref<32x2xf32, #tpu.memory_space<vmem>>, %arg5: memref<1x32xf32, #tpu.memory_space<vmem>>, %arg6: memref<1xf32, #tpu.memory_space<smem>>, %arg7: memref<1x1x16xf32, #tpu.memory_space<vmem>>, %arg8: memref<1x1x128xf32, #tpu.memory_space<vmem>>) attributes {dimension_semantics = [#tpu.dimension_semantics<parallel>], iteration_bounds = array<i64: 4>, scalar_prefetch = 0 : i64, scratch_operands = 0 : i64, tpu.core_type = #tpu.core_type<tc>, window_params = [{transform_indices = @transform_0, window_bounds = array<i64: 1, 16, 8>}, {transform_indices = @transform_1, window_bounds = array<i64: 1, 16, 16>}, {pipeline_mode = #tpu.pipeline_mode<synchronous>, transform_indices = @transform_2, window_bounds = array<i64: 8, 32>}, {pipeline_mode = #tpu.pipeline_mode<synchronous>, transform_indices = @transform_3, window_bounds = array<i64: 32, 2>}, {pipeline_mode = #tpu.pipeline_mode<synchronous>, transform_indices = @transform_4, window_bounds = array<i64: 1, 32>}, {transform_indices = @transform_5, window_bounds = array<i64: 1>}, {transform_indices = @transform_6, window_bounds = array<i64: 1, 1, 16>}, {transform_indices = @transform_7, window_bounds = array<i64: 1, 1, 128>}]} {
    %c0 = arith.constant 0 : index
    %c0_0 = arith.constant 0 : index
    %c0_1 = arith.constant 0 : index
    %0 = vector.load %arg1[%c0, %c0_0, %c0_1] : memref<1x16x8xf32, #tpu.memory_space<vmem>>, vector<1x16x8xf32>
    %1 = vector.shape_cast %0 : vector<1x16x8xf32> to vector<16x8xf32>
    %c0_2 = arith.constant 0 : index
    %c0_3 = arith.constant 0 : index
    %2 = vector.load %arg3[%c0_2, %c0_3] : memref<8x32xf32, #tpu.memory_space<vmem>>, vector<8x32xf32>
    %cst = arith.constant dense<0.000000e+00> : vector<16x32xf32>
    %3 = tpu.matmul %1, %2, %cst {dimension_numbers = #tpu.dot_dimension_numbers<[1], [0], [0], [1], [0, 0, 1, 1], [], []>} : vector<16x8xf32>, vector<8x32xf32>, vector<16x32xf32> -> vector<16x32xf32>
    %c0_4 = arith.constant 0 : index
    %c0_5 = arith.constant 0 : index
    %4 = vector.load %arg4[%c0_4, %c0_5] : memref<32x2xf32, #tpu.memory_space<vmem>>, vector<32x2xf32>
    %cst_6 = arith.constant dense<0.000000e+00> : vector<16x2xf32>
    %5 = tpu.matmul %3, %4, %cst_6 {dimension_numbers = #tpu.dot_dimension_numbers<[1], [0], [0], [1], [0, 0, 1, 1], [], []>} : vector<16x32xf32>, vector<32x2xf32>, vector<16x2xf32> -> vector<16x2xf32>
    %6 = vector.extract_strided_slice %5 {offsets = [0, 0], sizes = [16, 1], strides = [1, 1]} : vector<16x2xf32> to vector<16x1xf32>
    %7 = vector.extract_strided_slice %5 {offsets = [0, 1], sizes = [16, 1], strides = [1, 1]} : vector<16x2xf32> to vector<16x1xf32>
    %8 = tpu.transpose %7, [1, 0] : vector<16x1xf32> -> vector<1x16xf32>
    %9 = vector.broadcast %6 : vector<16x1xf32> to vector<16x16xf32>
    %10 = vector.broadcast %8 : vector<1x16xf32> to vector<16x16xf32>
    %11 = arith.addf %9, %10 : vector<16x16xf32>
    %cst_7 = arith.constant 0.000000e+00 : f32
    %12 = vector.broadcast %cst_7 : f32 to vector<16x16xf32>
    %13 = arith.cmpf ogt, %11, %12 : vector<16x16xf32>
    %cst_8 = arith.constant 2.000000e-01 : f32
    %14 = vector.broadcast %cst_8 : f32 to vector<16x16xf32>
    %15 = arith.mulf %14, %11 : vector<16x16xf32>
    %16 = arith.select %13, %11, %15 : vector<16x16xi1>, vector<16x16xf32>
    %c0_9 = arith.constant 0 : index
    %c0_10 = arith.constant 0 : index
    %c0_11 = arith.constant 0 : index
    %17 = vector.load %arg2[%c0_9, %c0_10, %c0_11] : memref<1x16x16xf32, #tpu.memory_space<vmem>>, vector<1x16x16xf32>
    %18 = vector.shape_cast %17 : vector<1x16x16xf32> to vector<16x16xf32>
    %cst_12 = arith.constant 0.000000e+00 : f32
    %19 = vector.broadcast %cst_12 : f32 to vector<16x16xf32>
    %20 = arith.cmpf ogt, %18, %19 : vector<16x16xf32>
    %cst_13 = arith.constant -1.000000e+30 : f32
    %21 = vector.broadcast %cst_13 : f32 to vector<16x16xf32>
    %22 = arith.select %20, %16, %21 : vector<16x16xi1>, vector<16x16xf32>
    %cst_14 = arith.constant dense<0xFF800000> : vector<16xf32>
    %23 = vector.multi_reduction <maximumf>, %22, %cst_14 [1] : vector<16x16xf32> to vector<16xf32>
    %24 = vector.shape_cast %23 : vector<16xf32> to vector<16x1xf32>
    %25 = vector.broadcast %24 : vector<16x1xf32> to vector<16x16xf32>
    %26 = arith.subf %22, %25 : vector<16x16xf32>
    %27 = math.exp %26 : vector<16x16xf32>
    %cst_15 = arith.constant dense<0.000000e+00> : vector<16xf32>
    %28 = vector.multi_reduction <add>, %27, %cst_15 [1] : vector<16x16xf32> to vector<16xf32>
    %29 = vector.shape_cast %28 : vector<16xf32> to vector<16x1xf32>
    %cst_16 = arith.constant 9.99999971E-10 : f32
    %30 = vector.broadcast %cst_16 : f32 to vector<16x1xf32>
    %31 = arith.addf %29, %30 : vector<16x1xf32>
    %32 = vector.broadcast %31 : vector<16x1xf32> to vector<16x16xf32>
    %33 = arith.divf %27, %32 : vector<16x16xf32>
    %cst_17 = arith.constant dense<0.000000e+00> : vector<16x32xf32>
    %34 = tpu.matmul %33, %3, %cst_17 {dimension_numbers = #tpu.dot_dimension_numbers<[1], [0], [0], [1], [0, 0, 1, 1], [], []>} : vector<16x16xf32>, vector<16x32xf32>, vector<16x32xf32> -> vector<16x32xf32>
    %cst_18 = arith.constant 0.000000e+00 : f32
    %35 = vector.broadcast %cst_18 : f32 to vector<16x32xf32>
    %36 = arith.cmpf ogt, %34, %35 : vector<16x32xf32>
    %37 = math.exp %34 : vector<16x32xf32>
    %cst_19 = arith.constant 1.000000e+00 : f32
    %38 = vector.broadcast %cst_19 : f32 to vector<16x32xf32>
    %39 = arith.subf %37, %38 : vector<16x32xf32>
    %40 = arith.select %36, %34, %39 : vector<16x32xi1>, vector<16x32xf32>
    %c0_20 = arith.constant 0 : index
    %c0_21 = arith.constant 0 : index
    %41 = vector.load %arg5[%c0_20, %c0_21] : memref<1x32xf32, #tpu.memory_space<vmem>>, vector<1x32xf32>
    %42 = vector.broadcast %41 : vector<1x32xf32> to vector<16x32xf32>
    %43 = arith.mulf %40, %42 : vector<16x32xf32>
    %cst_22 = arith.constant dense<0.000000e+00> : vector<16xf32>
    %44 = vector.multi_reduction <add>, %43, %cst_22 [1] : vector<16x32xf32> to vector<16xf32>
    %45 = vector.shape_cast %44 : vector<16xf32> to vector<16x1xf32>
    %c0_23 = arith.constant 0 : index
    %46 = memref.load %arg6[%c0_23] : memref<1xf32, #tpu.memory_space<smem>>
    %47 = vector.broadcast %46 : f32 to vector<16x1xf32>
    %48 = arith.addf %45, %47 : vector<16x1xf32>
    %49 = tpu.transpose %48, [1, 0] : vector<16x1xf32> -> vector<1x16xf32>
    %cst_24 = arith.constant 0.000000e+00 : f32
    %50 = vector.broadcast %cst_24 : f32 to vector<1x16xf32>
    %51 = arith.subf %50, %49 : vector<1x16xf32>
    %52 = math.exp %51 : vector<1x16xf32>
    %cst_25 = arith.constant 1.000000e+00 : f32
    %53 = vector.broadcast %cst_25 : f32 to vector<1x16xf32>
    %54 = arith.addf %53, %52 : vector<1x16xf32>
    %cst_26 = arith.constant 1.000000e+00 : f32
    %55 = vector.broadcast %cst_26 : f32 to vector<1x16xf32>
    %56 = arith.divf %55, %54 : vector<1x16xf32>
    %c0_27 = arith.constant 0 : index
    %c0_28 = arith.constant 0 : index
    %c0_29 = arith.constant 0 : index
    %57 = vector.load %arg7[%c0_27, %c0_28, %c0_29] : memref<1x1x16xf32, #tpu.memory_space<vmem>>, vector<1x1x16xf32>
    %58 = vector.shape_cast %57 : vector<1x1x16xf32> to vector<1x16xf32>
    %59 = vector.shape_cast %56 : vector<1x16xf32> to vector<1x1x16xf32>
    tpu.vector_store %arg7[%c0_27, %c0_28, %c0_29], %59 {strides = array<i32>} : memref<1x1x16xf32, #tpu.memory_space<vmem>>, vector<1x1x16xf32>,
    %cst_30 = arith.constant 5.000000e-01 : f32
    %60 = vector.broadcast %cst_30 : f32 to vector<1x16xf32>
    %61 = arith.cmpf ogt, %56, %60 : vector<1x16xf32>
    %cst_31 = arith.constant 1.000000e+00 : f32
    %cst_32 = arith.constant 0.000000e+00 : f32
    %62 = vector.broadcast %cst_31 : f32 to vector<1x16xf32>
    %63 = vector.broadcast %cst_32 : f32 to vector<1x16xf32>
    %64 = arith.select %61, %62, %63 : vector<1x16xi1>, vector<1x16xf32>
    %cst_33 = arith.constant dense<0.000000e+00> : vector<1xf32>
    %65 = vector.multi_reduction <add>, %64, %cst_33 [1] : vector<1x16xf32> to vector<1xf32>
    %66 = vector.shape_cast %65 : vector<1xf32> to vector<1x1xf32>
    %67 = vector.shape_cast %66 : vector<1x1xf32> to vector<1x1xf32>
    %68 = vector.broadcast %67 : vector<1x1xf32> to vector<1x128xf32>
    %c0_34 = arith.constant 0 : index
    %c0_35 = arith.constant 0 : index
    %c0_36 = arith.constant 0 : index
    %69 = vector.load %arg8[%c0_34, %c0_35, %c0_36] : memref<1x1x128xf32, #tpu.memory_space<vmem>>, vector<1x1x128xf32>
    %70 = vector.shape_cast %69 : vector<1x1x128xf32> to vector<1x128xf32>
    %71 = vector.shape_cast %68 : vector<1x128xf32> to vector<1x1x128xf32>
    tpu.vector_store %arg8[%c0_34, %c0_35, %c0_36], %71 {strides = array<i32>} : memref<1x1x128xf32, #tpu.memory_space<vmem>>, vector<1x1x128xf32>,
    return
  }
  func.func @transform_0(%arg0: i32) -> (i32, i32, i32) {
    %c0_i32 = arith.constant 0 : i32
    %c0_i32_0 = arith.constant 0 : i32
    %c0_i32_1 = arith.constant 0 : i32
    return %arg0, %c0_i32, %c0_i32_0 : i32, i32, i32
  }
  func.func @transform_1(%arg0: i32) -> (i32, i32, i32) {
    %c0_i32 = arith.constant 0 : i32
    %c0_i32_0 = arith.constant 0 : i32
    %c0_i32_1 = arith.constant 0 : i32
    return %arg0, %c0_i32, %c0_i32_0 : i32, i32, i32
  }
  func.func @transform_2(%arg0: i32) -> (i32, i32) {
    %c0_i32 = arith.constant 0 : i32
    %c0_i32_0 = arith.constant 0 : i32
    %c0_i32_1 = arith.constant 0 : i32
    return %c0_i32, %c0_i32_0 : i32, i32
  }
  func.func @transform_3(%arg0: i32) -> (i32, i32) {
    %c0_i32 = arith.constant 0 : i32
    %c0_i32_0 = arith.constant 0 : i32
    %c0_i32_1 = arith.constant 0 : i32
    return %c0_i32, %c0_i32_0 : i32, i32
  }
  func.func @transform_4(%arg0: i32) -> (i32, i32) {
    %c0_i32 = arith.constant 0 : i32
    %c0_i32_0 = arith.constant 0 : i32
    %c0_i32_1 = arith.constant 0 : i32
    return %c0_i32, %c0_i32_0 : i32, i32
  }
  func.func @transform_5(%arg0: i32) -> i32 {
    %c0_i32 = arith.constant 0 : i32
    %c0_i32_0 = arith.constant 0 : i32
    return %c0_i32 : i32
  }
  func.func @transform_6(%arg0: i32) -> (i32, i32, i32) {
    %c0_i32 = arith.constant 0 : i32
    %c0_i32_0 = arith.constant 0 : i32
    %c0_i32_1 = arith.constant 0 : i32
    return %arg0, %c0_i32, %c0_i32_0 : i32, i32, i32
  }
  func.func @transform_7(%arg0: i32) -> (i32, i32, i32) {
    %c0_i32 = arith.constant 0 : i32
    %c0_i32_0 = arith.constant 0 : i32
    %c0_i32_1 = arith.constant 0 : i32
    return %arg0, %c0_i32, %c0_i32_0 : i32, i32, i32
  }
}

</mosaic_0001>

<bundles_post_ra>
// kernel: tpu_custom_call.1
= control target key start
LH: loop header
LB: loop body
LE: loop exit
PB: predicated region body
PF: predicated region fallthrough
CT: control target
= control target key end

     0   :  { %s1300_s0 = inlined_call_operand.vmem [shape: f32[4,16,8], index: 0, kind: input, shape index: {}]   ;;  %s1301_s1 = inlined_call_operand.vmem [shape: f32[4,16,16], index: 1, kind: input, shape index: {}]   ;;  %s1302_s2 = inlined_call_operand.vmem [shape: f32[8,32], index: 2, kind: input, shape index: {}]   ;;  %s1303_s3 = inlined_call_operand.vmem [shape: f32[32,2], index: 3, kind: input, shape index: {}]   ;;  %s1304_s4 = inlined_call_operand.vmem [shape: f32[1,32], index: 4, kind: input, shape index: {}]   ;;  %s1305_s5 = inlined_call_operand.<no memory space> [shape: f32[1], index: 5, kind: input, shape index: {}]   ;;  %s1306_s6 = inlined_call_operand.hbm [shape: f32[4,1,16], index: 6, kind: output, shape index: {0}]   ;;  %s1307_s7 = inlined_call_operand.hbm [shape: f32[4,1,128], index: 7, kind: output, shape index: {1}]  }
   0x1   :  { %13 = sst [smem:[#allocation2]] %s1305_s5 }
   0x2   :  { %14 = vsyncpa [#allocation4], 0 }
   0x3   :  { %16 = vsyncpa [#allocation4 + $0x1], 0 }
   0x4   :  { %17 = vsyncpa [#allocation6], 0 }
   0x5   :  { %19 = vsyncpa [#allocation6 + $0x1], 0  ;;  %s1130_s26 = smov 0   ;;  %s1132_s27 = smov 0  }
   0x6   :  { %s1134_s28 = smov 0   ;;  %s1136_s29 = smov 0  }
   0x7 LB: > { %s1151_s5 = sadd.s32 4294967295, %s1080_s29   ;;  %s850_s30 = sadd.s32 4294967294, %s1080_s29   ;;  %s1080_s29 = sphi %s1136_s29, %s1313_s29   ;;  %s1076_s28 = sphi %s1134_s28, %s1312_s28   ;;  %s1072_s27 = sphi %s1132_s27, %s1311_s27   ;;  %s1068_s26 = sphi %s1130_s26, %s1310_s26  }
   0x8   : > { %s1155_s8 = sadd.s32 1, %s1080_s29   ;;  %s168_s9 = sadd.s32 1, %s1076_s28 }
   0x9   : > { %s165_s10 = ssub.s32 %s1080_s29, %s1155_s8  ;;  %p178_p0 = scmp.ne.s32.totalorder %s1076_s28, %s1072_s27 }
   0xa   : > { %p166_p1 = scmp.eq.s32.totalorder %s165_s10, 0  ;;  %p179_p2 = scmp.eq.s32.totalorder %s1151_s5, 3 }
   0xb   : > { %p184_p3 = scmp.ne.s32.totalorder %s1072_s27, %s1068_s26  ;;  %p185_p4 = scmp.eq.s32.totalorder %s850_s30, 3 }
   0xc   : > { %s1166_s11 = scalar_select %p166_p1, %s1076_s28, %s168_s9  }
   0xd   : > { %p1168_p5 = por %p179_p2, %p178_p0  ;;  %p1172_p6 = por %p185_p4, %p184_p3 }
   0xe   : > { %p853_p7 = scmp.ge.s32.totalorder %s1080_s29, 1  ;;  %p257_p8 = scmp.lt.s32.totalorder %s1080_s29, 5 }
  0x10   : > { %p258_p9 = pnand %p853_p7, %p257_p8 }
  0x11   : > { %v309_v0 = vld [vmem:[%s1302_s2] sm:$0xff] (!%p258_p9)  ;;  %p297_p10 = scmp.lt.s32.totalorder (!%p258_p9), %s1151_s5, 3  ;;  %v393_v2 = vld [vmem:[%s1303_s3 + $0x8] sm:$0xff] (!%p258_p9)  ;;  %v394_v4 = vld [vmem:[%s1303_s3 + $0x10] sm:$0xff] (!%p258_p9)  ;;  %vm310_vm0 = vcmask (!%p258_p9), 64512   ;;  %vm396_vm1 = vcmask (!%p258_p9), 261120   ;;  %v526_v17 = vlaneseq (!%p258_p9) }
  0x12   : > { %261 = sbr.rel (%p258_p9) target bundleno = 1722 (0x6ba), region = 44  ;;  %v392_v1 = vld [vmem:[%s1303_s3] sm:$0xff] (!%p258_p9)  ;;  %886 = vmatprep.subr.mxu0 (!%p258_p9), %v309_v0  ;;  %v395_v5 = vld [vmem:[%s1303_s3 + $0x18] sm:$0xff] (!%p258_p9)  ;;  %v1082_v12 = vmov (!%p258_p9), 0   ;;  %s1083_s14 = smov (!%p258_p9), 127   ;;  %vm544_vm6 = vcmask (!%p258_p9), 130048  }
  0x13   : > { %v909_v3 = vpack.c.bf16 (!%p258_p9), %v393_v2, %v392_v1  ;;  %887 = vmatpush3.msra.mxu0 (!%p258_p9), %v309_v0  ;;  %v913_v6 = vpack.c.bf16 (!%p258_p9), %v395_v5, %v394_v4  ;;  %968 = vset.pattern.permute.xlu1 (!%p258_p9), %v1082_v12  ;;  %v527_v18 = vshrl.u32 (!%p258_p9), %v526_v17, 7  ;;  %v866_v62 = vld [vmem:[%s1304_s4] ss:$0 sm:$0xff] (!%p258_p9)  ;;  %s675_s20 = sld [smem:[#allocation2]] (!%p258_p9)  ;;  %s1222_s21 = sand.u32 (!%p258_p9), 1, %s1072_s27   ;;  %vm717_vm9 = vcmask (!%p258_p9), 122880  }
  0x14   : > { %s290_s22 = scalar_lea.vmem (!%p258_p9), [#allocation3], %s1222_s21  ;;  %s867_s23 = sshll.u32 (!%p258_p9), %s1151_s5, 4 }
  0x15   : > { %910 = vmatprep.subr.bf16.mxu1 (!%p258_p9), %v909_v3  ;;  %v528_v20 = vsub.s32 (!%p258_p9), 0, %v527_v18  ;;  %s1231_s30 = scalar_lea.hbm (!%p258_p9), %s1306_s6, %s867_s23  ;;  %s742_s9 = sshll.u32 (!%p258_p9), %s290_s22, 4  ;;  %s743_s9 = int_to_ptr.vmem [resolvable:$true] %s742_s9 }
  0x16   : > { %912 = vmatpush3.bf16.msra.mxu1 (!%p258_p9), %v909_v3  ;;  %s1085_s15 = smov (!%p258_p9), [#allocation3]  }
  0x17   : > { %914 = vmatprep.subr.bf16.mxu1 (!%p258_p9), %v913_v6  ;;  %s990_s16 = sshll.u32 (!%p258_p9), %s1085_s15, 4  ;;  %s991_s16 = int_to_ptr.vmem [resolvable:$false] %s990_s16 }
  0x18   : > { %p993_p0 = scmp.lt.s32.totalorder (!%p258_p9), %s743_s9, %s991_s16 }
  0x19   : > { %s1195_s24 = scalar_select %p297_p10, %s1151_s5, 3  ;;  %v676_v5 = vstv %s675_s20 }
  0x1a   : > { %916 = vmatpush3.bf16.msra.mxu1 %v913_v6 }
  0x1b   : > { %s871_s25 = sshll.u32 %s1195_s24, 4 }
  0x1c   : > { %s301_s10 = scalar_lea.vmem %s1300_s0, %s871_s25  ;;  %s306_s17 = scalar_lea.vmem %s1301_s1, %s871_s25 }
  0x1d   : > { %v307_v7 = vld [vmem:[%s301_s10] sm:$0xff]  ;;  %v308_v8 = vld [vmem:[%s301_s10 + $0x8] sm:$0xff]  ;;  %s726_s10 = scalar_lea.sflag [#allocation4], %s1222_s21 }
  0x1e   : > { %888 = vmatprep.mubr.msk.f32.mxu0 %vm310_vm0, %v307_v7  ;;  %v539_v23 = vld [vmem:[%s306_s17 + $0x8] sm:$0xff]  ;;  %v538_v24 = vld [vmem:[%s306_s17] sm:$0xff]  ;;  %s992_s17 = scalar_lea.vmem %s991_s16, 32 }
  0x1f   : > { %889 = vmatmul.mubr.msk.f32.vlgmr.msra.gmra.mrb[0].mxu0 %vm310_vm0, %v308_v8  ;;  %vm541_vm2 = vcmp.gt.f32.partialorder %v539_v23, 0.0  ;;  %vm540_vm3 = vcmp.gt.f32.partialorder %v538_v24, 0.0 }
  0xf2   : > { %v890_v9 = vpop.f32.mrb[0].mxu0 }
  0xf3   : > { %v383_v10 = vpop.f32.mrb[1].mxu0 }
  0xf4   : > { %v917_v11 = vpack.c.bf16 %v890_v9, %v383_v10  ;;  %899 = vmatprep.mubr.msk.f32.mxu1 %vm396_vm1, %v383_v10 }
  0xf5   : > { %900 = vmatmul.mubr.msk.f32.vlgmr.msra.gmra.mrb[0].mxu1 %vm396_vm1, %v890_v9 }
  0xf6   : > { %918 = vmatprep.subr.bf16.mxu0 %v917_v11 }
  0xf7   : > { %920 = vmatpush3.bf16.msra.mxu0 %v917_v11 }
 0x1c8   : > { %v901_v13 = vpop.f32.mrb[0].mxu1 }
 0x1c9   : > { %v469_v14 = vpop.f32.mrb[1].mxu1 }
 0x1ca   : > { %519 = vperm.xlu1 %968, %v469_v14   ;;  %480 = vrot.lane.b32.xlu0 %v469_v14, %s1083_s14 }
 0x1ce   : > { %523 = vperm.xlu1 %968, %v901_v13   ;;  %482 = vrot.lane.b32.xlu0 %v901_v13, %s1083_s14  ;;  %s986_s14 = scalar_lea.vmem %s743_s9, 16 }
 0x1cf   : > { %p987_p11 = scmp.ne.s32.totalorder %s743_s9, %s986_s14  ;;  %p994_p1 = scmp.lt.s32.totalorder %s992_s17, %s986_s14 }
 0x1d1   : > { %p988_p12 = pnand %p987_p11, %p1168_p5  ;;  %p995_p2 = por %p994_p1, %p993_p0 }
 0x1d3   : > { %p989_p13 = pneg %p988_p12 }
 0x1d5   : > { %p996_p3 = pnand %p995_p2, %p989_p13 }
 0x23c   : > { %v481_v15 = vpop.permute.xlu0 %480 }
 0x23d   : > { %486 = vxpose.xlu0.b32.start [1/2] (short) (narrow) %v481_v15, 8 }
 0x240   : > { %v483_v16 = vpop.permute.xlu0 %482 }
 0x241   : > { %487 = vxpose.xlu0.b32.end [2/2] (short) (narrow) %v483_v16, 8  ;;  %v1084_v16 = vmov 0.0  }
 0x249   : > { %v520_v19 = vpop.permute.xlu1 %519 }
 0x24d   : > { %v524_v25 = vpop.permute.xlu1 %523 }
 0x26a   : > { %969 = vset.pattern.permute.xlu0 %v1082_v12 }
 0x2bd   : > { %v502_v21 = vpop.trf.xlu0 }
 0x2be   : > { %v529_v22 = vrot.slane %v502_v21, %v528_v20 }
 0x2c0   : > { %v530_v26 = vadd.f32 %v529_v22, %v520_v19  ;;  %v531_v27 = vadd.f32 %v529_v22, %v524_v25 }
 0x2c2   : > { %vm533_vm4 = vcmp.gt.f32.partialorder %v531_v27, 0.0  ;;  %v535_v28 = vmul.f32 0.2, %v531_v27  ;;  %vm532_vm5 = vcmp.gt.f32.partialorder %v530_v26, 0.0  ;;  %v534_v29 = vmul.f32 0.2, %v530_v26 }
 0x2c4   : > { %v537_v30 = vsel %vm533_vm4, %v531_v27, %v535_v28  ;;  %v536_v31 = vsel %vm532_vm5, %v530_v26, %v534_v29 }
 0x2c5   : > { %v543_v32 = vsel %vm541_vm2, %v537_v30, -1e+30  ;;  %v542_v33 = vsel %vm540_vm3, %v536_v31, -1e+30 }
 0x2c6   : > { %v548_v34 = vsel %vm544_vm6, %v543_v32, -inf  ;;  %v545_v35 = vsel %vm544_vm6, %v542_v33, -inf }
 0x2c7   : > { %549 = vmax.xlane.f32.xlu0 %v548_v34  ;;  %546 = vmax.xlane.f32.xlu1 %v545_v35 }
 0x354   : > { %v550_v36 = vpop.xlane.xlu0 %549  ;;  %v547_v37 = vpop.xlane.xlu1 %546 }
 0x355   : > { %v552_v38 = vsub.f32 %v543_v32, %v550_v36  ;;  %v551_v39 = vsub.f32 %v542_v33, %v547_v37 }
 0x357   : > { %v553_v40 = vmul.f32 1.442695, %v551_v39  ;;  %v555_v41 = vmul.f32 1.442695, %v552_v38 }
 0x359   : > { %970 = vpow2.f32 %v553_v40 }
 0x35a   : > { %972 = vpow2.f32 %v555_v41 }
 0x363   : > { %v971_v42 = vpop.eup %970 }
 0x364   : > { %v557_v43 = vsel %vm544_vm6, %v971_v42, 0.0  ;;  %v973_v44 = vpop.eup %972 }
 0x365   : > { %558 = vadd.xlane.f32.xlu1 %v557_v43  ;;  %v560_v45 = vsel %vm544_vm6, %v973_v44, 0.0 }
 0x369   : > { %561 = vadd.xlane.f32.xlu1 %v560_v45 }
 0x3f2   : > { %v559_v46 = vpop.xlane.xlu1 %558 }
 0x3f3   : > { %v563_v47 = vadd.f32 1e-09, %v559_v46 }
 0x3f5   : > { %974 = vrcp.f32 %v563_v47 }
 0x3f6   : > { %v562_v48 = vpop.xlane.xlu1 %561 }
 0x3f7   : > { %v564_v49 = vadd.f32 1e-09, %v562_v48 }
 0x3f9   : > { %976 = vrcp.f32 %v564_v49 }
 0x3ff   : > { %v975_v50 = vpop.eup %974 }
 0x400   : > { %v566_v51 = vmul.f32 %v975_v50, %v971_v42 }
 0x402   : > { %906 = vmatprep.mubr.msk.f32.mxu0 %vm544_vm6, %v566_v51 }
 0x403   : > { %v977_v52 = vpop.eup %976 }
 0x404   : > { %v568_v53 = vmul.f32 %v977_v52, %v973_v44 }
 0x406   : > { %907 = vmatmul.mubr.msk.f32.vlgmr.msra.gmra.mrb[2].mxu0 %vm544_vm6, %v568_v53 }
 0x4d9   : > { %v908_v54 = vpop.f32.mrb[2].mxu0 }
 0x4da   : > { %v654_v55 = vmul.f32 1.442695, %v908_v54  ;;  %v641_v56 = vpop.f32.mrb[3].mxu0  ;;  %vm651_vm7 = vcmp.gt.f32.partialorder %v908_v54, 0.0 }
 0x4db   : > { %v652_v57 = vmul.f32 1.442695, %v641_v56  ;;  %vm650_vm8 = vcmp.gt.f32.partialorder %v641_v56, 0.0 }
 0x4dc   : > { %978 = vpow2.f32 %v654_v55 }
 0x4dd   : > { %980 = vpow2.f32 %v652_v57 }
 0x4e6   : > { %v979_v58 = vpop.eup %978 }
 0x4e7   : > { %v981_v59 = vpop.eup %980  ;;  %v865_v60 = vadd.f32 -1.0, %v979_v58 }
 0x4e8   : > { %v864_v61 = vadd.f32 -1.0, %v981_v59 }
 0x4e9   : > { %v659_v0 = vsel %vm651_vm7, %v908_v54, %v865_v60 }
 0x4ea   : > { %v658_v63 = vsel %vm650_vm8, %v641_v56, %v864_v61  ;;  %v668_v3 = vmul.f32 %v866_v62, %v659_v0 }
 0x4eb   : > { %v667_v1 = vmul.f32 %v866_v62, %v658_v63 }
 0x4ec   : > { %v672_v4 = vsel %vm396_vm1, %v668_v3, 0.0 }
 0x4ed   : > { %v669_v2 = vsel %vm396_vm1, %v667_v1, 0.0 }
 0x4ee   : > { %670 = vadd.xlane.f32.xlu1 %v669_v2 }
 0x4f2   : > { %673 = vadd.xlane.f32.xlu1 %v672_v4 }
 0x57b   : > { %v671_v6 = vpop.xlane.xlu1 %670 }
 0x57c   : > { %v677_v7 = vadd.f32 %v676_v5, %v671_v6 }
 0x57e   : > { %679 = vxpose.xlu1.b32.start [1/2] (short) (narrow) %v677_v7, 8 }
 0x57f   : > { %v674_v8 = vpop.xlane.xlu1 %673 }
 0x580   : > { %v678_v9 = vadd.f32 %v676_v5, %v674_v8 }
 0x582   : > { %680 = vxpose.xlu1.b32.end [2/2] (short) (narrow) %v678_v9, 8 }
 0x5fe   : > { %v695_v10 = vpop.trf.xlu1 }
 0x5ff   : > { %v711_v11 = vsub.f32 0.0, %v695_v10 }
 0x601   : > { %v712_v12 = vmul.f32 1.442695, %v711_v11 }
 0x603   : > { %982 = vpow2.f32 %v712_v12 }
 0x60d   : > { %v983_v13 = vpop.eup %982 }
 0x60e   : > { %v714_v14 = vadd.f32 1.0, %v983_v13 }
 0x610   : > { %984 = vrcp.f32 %v714_v14 }
 0x61a   : > { %v985_v15 = vpop.eup %984 }
 0x61b   : > { %vm719_vm10 = vcmp.gt.f32.partialorder %v985_v15, 0.5  ;;  %718 = vst.msk [vmem:[%s290_s22] sm:$0x1] %vm717_vm9, %v985_v15 }
 0x61c   : > { %v720_v17 = vsel %vm719_vm10, 1.0, %v1084_v16 }
 0x61d   : > { %v721_v18 = vsel %vm717_vm9, %v720_v17, 0.0 }
 0x61e   : > { %722 = vadd.xlane.f32.xlu0 %v721_v18 }
 0x61f   : > { %999 = shalt.err (!%p996_p3)
}
 0x620   : > { %s1000_s18 = scalar_lea.hbm %s1231_s30, 16  ;;  %s1004_s22 = scalar_lea.hbm %s1306_s6, 64 }
 0x621   : > { %p1001_p4 = scmp.ne.s32.totalorder %s1231_s30, %s1000_s18  ;;  %p1005_p9 = scmp.lt.u32.totalorder %s1231_s30, %s1306_s6 }
 0x622   : > { %p1006_p10 = scmp.lt.u32.totalorder %s1004_s22, %s1000_s18  ;;  %p1008_p12 = scmp.lt.u32.totalorder %s1000_s18, %s1231_s30 }
 0x623   : > { %p1002_p7 = pnand %p1001_p4, %p1168_p5 }
 0x624   : > { %p1007_p11 = por %p1006_p10, %p1005_p9 }
 0x625   : > { %p1003_p8 = pneg %p1002_p7 }
 0x626   : > { %p1009_p13 = por %p1008_p12, %p1007_p11 }
 0x628   : > { %p1010_p0 = pnand %p1009_p13, %p1003_p8 }
 0x62a   : > { %1013 = shalt.err (!%p1010_p0)
}
 0x62b   : > { %921 = dma.vmem_to_hbm [thread:$0]  (%p1168_p5), %s743_s9, 16, %s1231_s30, %s726_s10  }
 0x62c   : > { %s296_s14 = scalar_lea.vmem [#allocation5], %s1222_s21  ;;  %s1259_s18 = scalar_lea.hbm %s1307_s7, %s867_s23 }
 0x62d   : > { %s755_s15 = sshll.u32 %s296_s14, 4  ;;  %s730_s19 = scalar_lea.sflag [#allocation6], %s1222_s21  ;;  %s1252_s15 = int_to_ptr.vmem [resolvable:$true] %s755_s15 }
 0x62e   : > { %s1014_s20 = scalar_lea.vmem %s1252_s15, 16  ;;  %s1086_s30 = smov [#allocation5]  }
 0x62f   : > { %p1015_p1 = scmp.ne.s32.totalorder %s1252_s15, %s1014_s20  ;;  %s1018_s9 = sshll.u32 %s1086_s30, 4  ;;  %s1019_s9 = int_to_ptr.vmem [resolvable:$false] %s1018_s9 }
 0x630   : > { %s1020_s5 = scalar_lea.vmem %s1019_s9, 32  ;;  %p1021_p4 = scmp.lt.s32.totalorder %s1252_s15, %s1019_s9 }
 0x631   : > { %p1016_p2 = pnand %p1015_p1, %p1168_p5  ;;  %p1022_p7 = scmp.lt.s32.totalorder %s1020_s5, %s1014_s20 }
 0x633   : > { %p1017_p3 = pneg %p1016_p2  ;;  %p1023_p8 = por %p1022_p7, %p1021_p4 }
 0x635   : > { %p1024_p9 = pnand %p1023_p8, %p1017_p3 }
 0x6ab   : > { %v723_v19 = vpop.xlane.xlu0 %722 }
 0x6ac   : > { %724 = vst [vmem:[%s296_s14] sm:$0x1] %v723_v19 }
 0x6ad   : > { %1027 = shalt.err (!%p1024_p9)
}
 0x6ae   : > { %s1028_s21 = scalar_lea.hbm %s1259_s18, 16  ;;  %s1032_s22 = scalar_lea.hbm %s1307_s7, 64 }
 0x6af   : > { %p1029_p10 = scmp.ne.s32.totalorder %s1259_s18, %s1028_s21  ;;  %p1033_p13 = scmp.lt.u32.totalorder %s1259_s18, %s1307_s7 }
 0x6b0   : > { %p1034_p0 = scmp.lt.u32.totalorder %s1032_s22, %s1028_s21  ;;  %p1036_p2 = scmp.lt.u32.totalorder %s1028_s21, %s1259_s18 }
 0x6b1   : > { %p1030_p11 = pnand %p1029_p10, %p1168_p5 }
 0x6b2   : > { %p1035_p1 = por %p1034_p0, %p1033_p13 }
 0x6b3   : > { %p1031_p12 = pneg %p1030_p11 }
 0x6b4   : > { %p1037_p3 = por %p1036_p2, %p1035_p1 }
 0x6b6   : > { %p1038_p4 = pnand %p1037_p3, %p1031_p12 }
 0x6b8   : > { %1041 = shalt.err (!%p1038_p4)
}
 0x6b9   : > { %922 = dma.vmem_to_hbm [thread:$0]  (%p1168_p5), %s1252_s15, 16, %s1259_s18, %s730_s19  }
 0x6ba PF: > { %p932_p7 = scmp.ge.s32.totalorder %s1080_s29, 2  ;;  %s767_s14 = sand.u32 1, %s1068_s26  }
 0x6bb   : > { %s768_s16 = scalar_lea.sflag [#allocation4], %s767_s14 }
 0x6bc   : > { %p926_p8 = pnand %p932_p7, %p1172_p6 }
 0x6be   : > { %1059 = dma.done.wait (!%p926_p8), %s768_s16, 16  }
 0x6bf   : > { %1061 = vsyncadd (!%p926_p8), %s768_s16, 4294967280  ;;  %s776_s17 = scalar_lea.sflag [#allocation6], %s767_s14 }
 0x6c0   : > { %1063 = dma.done.wait (!%p926_p8), %s776_s17, 16  }
 0x6c1   : > { %1065 = vsyncadd (!%p926_p8), %s776_s17, 4294967280  ;;  %p22_p5 = scmp.ge.s32.totalorder %s1155_s8, 6   ;;  %s1310_s26 = smov %s1072_s27 }
 0x6c2   : > { %s1311_s27 = smov %s1076_s28  ;;  %s1312_s28 = smov %s1166_s11 }
 0x6c3   : > { %s1313_s29 = smov %s1155_s8  ;;  %24 = sbr.rel (!%p22_p5) target bundleno = 7 (0x7), region = 99 }
 0x6ca   :  { %780 = vsyncpa [#allocation4], 1 }
 0x6cb   :  { %782 = vsyncpa [#allocation4 + $0x1], 1 }
 0x6cc   :  { %783 = vsyncpa [#allocation6], 1 }
 0x6cd   :  { %785 = vsyncpa [#allocation6 + $0x1], 1 }

</bundles_post_ra>
